<compile_context>
chip_gen: v7x
topology: tpu7x:2x2x1
jax: 0.10.0
libtpu: 0.0.40
codegen_flags: <defaults>
</compile_context>

<pallas_src>
import jax
import jax.numpy as jnp
from jax.experimental import pallas as pl
from jax.experimental.pallas import tpu as pltpu

# torchvision rgb_to_grayscale coefficients
_R_W, _G_W, _B_W = 0.2989, 0.587, 0.114

# ~4 MiB input block target (3 channels * TILE_R * LANE * itemsize)
_TARGET_BLOCK_BYTES = 4 * 1024 * 1024
_LANE_CANDIDATES = (4096, 2048, 1024, 512, 256, 128)


def _round_up(x: int, m: int) -> int:
    return (x + m - 1) // m * m


def _pick_lane(n_pad: int) -> int:
    """Largest lane width (multiple of 128) dividing n_pad, preferring >=8 rows."""
    divisors = [l for l in _LANE_CANDIDATES if n_pad % l == 0]
    for l in divisors:                 # n_pad is a multiple of 128 -> non-empty
        if n_pad // l >= 8:
            return l
    return divisors[-1]


def _grayscale_kernel(x_ref, o_ref):
    # x_ref: (3, TILE_R, LANE)   (batch dim squeezed out by BlockSpec)
    # o_ref: (1, TILE_R, LANE)
    r = x_ref[0]
    g = x_ref[1]
    b = x_ref[2]
    o_ref[0] = (_R_W * r + _G_W * g + _B_W * b).astype(o_ref.dtype)


def video_grayscale(video: jax.Array) -> jax.Array:
    """video: (B, 3, T, H, W) -> (B, 1, T, H, W), matching VideoGrayScaler."""
    B, C, T, H, W = video.shape
    assert C == 3, "VideoGrayScaler expects 3 input (RGB) channels"
    dtype = video.dtype
    itemsize = jnp.dtype(dtype).itemsize

    # --- flatten pixels and make the last dim lane-dense -------------------
    n = T * H * W
    n_pad = _round_up(n, 128)
    flat = video.reshape(B, 3, n)
    if n_pad != n:
        flat = jnp.pad(flat, ((0, 0), (0, 0), (0, n_pad - n)))

    lane = _pick_lane(n_pad)
    rows = n_pad // lane
    x2 = flat.reshape(B, 3, rows, lane)

    # --- pick a row-tile so the input block is ~4 MiB -----------------------
    bytes_per_row = 3 * lane * itemsize
    max_rows = max(8, (_TARGET_BLOCK_BYTES // bytes_per_row) // 8 * 8)
    if rows <= max_rows:
        tile_r = rows                      # full extent (no (8) requirement)
    else:
        tile_r = max_rows                  # multiple of 8; ragged tail handled
    grid = (B, pl.cdiv(rows, tile_r))

    out = pl.pallas_call(
        _grayscale_kernel,
        out_shape=jax.ShapeDtypeStruct((B, 1, rows, lane), dtype),
        grid=grid,
        in_specs=[
            pl.BlockSpec((None, 3, tile_r, lane), lambda b, r: (b, 0, r, 0)),
        ],
        out_specs=pl.BlockSpec((None, 1, tile_r, lane), lambda b, r: (b, 0, r, 0)),
        compiler_params=pltpu.CompilerParams(
            dimension_semantics=("parallel", "parallel"),
            vmem_limit_bytes=32 * 1024 * 1024,
        ),
    )(x2)

    # --- undo the layout plumbing -------------------------------------------
    gray = out.reshape(B, 1, n_pad)[:, :, :n].reshape(B, 1, T, H, W)
    return gray


def _reference(video: jax.Array) -> jax.Array:
    # Pure-JAX reference replicating the PyTorch forward exactly.
    v = jnp.swapaxes(jnp.swapaxes(video, -4, -3), -2, -1)          # (B, T, C, W, H)
    w = jnp.array([_R_W, _G_W, _B_W], dtype=v.dtype)
    gray = jnp.einsum("btcwh,c->btwh", v, w)[:, :, None, :, :]     # (B, T, 1, W, H)
    return jnp.swapaxes(jnp.swapaxes(gray, -4, -3), -2, -1)        # (B, 1, T, H, W)


if __name__ == "__main__":
    key = jax.random.PRNGKey(0)
    B, C, T, H, W = 2, 3, 8, 16, 16
    video = jax.random.uniform(key, (B, C, T, H, W), dtype=jnp.float32)

    out = video_grayscale(video)
    out = jax.block_until_ready(out)

    ref = _reference(video)
    assert out.shape == (B, 1, T, H, W)
    assert jnp.allclose(out, ref, atol=1e-5, rtol=1e-5)

    print("KERNEL_OK")
</pallas_src>

<mosaic_0001>
module attributes {stable_mosaic.version = 11 : i64} {
  func.func @_grayscale_kernel(%arg0: i32, %arg1: i32, %arg2: memref<1x3x8x256xf32, #tpu.memory_space<vmem>>, %arg3: memref<1x1x8x256xf32, #tpu.memory_space<vmem>>) attributes {dimension_semantics = [#tpu.dimension_semantics<parallel>, #tpu.dimension_semantics<parallel>], iteration_bounds = array<i64: 2, 1>, scalar_prefetch = 0 : i64, scratch_operands = 0 : i64, tpu.core_type = #tpu.core_type<tc>, window_params = [{transform_indices = @transform_0, window_bounds = array<i64: 1, 3, 8, 256>}, {transform_indices = @transform_1, window_bounds = array<i64: 1, 1, 8, 256>}]} {
    %c0 = arith.constant 0 : index
    %c0_0 = arith.constant 0 : index
    %c0_1 = arith.constant 0 : index
    %c0_2 = arith.constant 0 : index
    %0 = vector.load %arg2[%c0, %c0_0, %c0_1, %c0_2] : memref<1x3x8x256xf32, #tpu.memory_space<vmem>>, vector<1x1x8x256xf32>
    %1 = vector.shape_cast %0 : vector<1x1x8x256xf32> to vector<8x256xf32>
    %c0_3 = arith.constant 0 : index
    %c1 = arith.constant 1 : index
    %c0_4 = arith.constant 0 : index
    %c0_5 = arith.constant 0 : index
    %2 = vector.load %arg2[%c0_3, %c1, %c0_4, %c0_5] : memref<1x3x8x256xf32, #tpu.memory_space<vmem>>, vector<1x1x8x256xf32>
    %3 = vector.shape_cast %2 : vector<1x1x8x256xf32> to vector<8x256xf32>
    %c0_6 = arith.constant 0 : index
    %c2 = arith.constant 2 : index
    %c0_7 = arith.constant 0 : index
    %c0_8 = arith.constant 0 : index
    %4 = vector.load %arg2[%c0_6, %c2, %c0_7, %c0_8] : memref<1x3x8x256xf32, #tpu.memory_space<vmem>>, vector<1x1x8x256xf32>
    %5 = vector.shape_cast %4 : vector<1x1x8x256xf32> to vector<8x256xf32>
    %cst = arith.constant 2.989000e-01 : f32
    %6 = vector.broadcast %cst : f32 to vector<8x256xf32>
    %7 = arith.mulf %6, %1 : vector<8x256xf32>
    %cst_9 = arith.constant 5.870000e-01 : f32
    %8 = vector.broadcast %cst_9 : f32 to vector<8x256xf32>
    %9 = arith.mulf %8, %3 : vector<8x256xf32>
    %10 = arith.addf %7, %9 : vector<8x256xf32>
    %cst_10 = arith.constant 1.140000e-01 : f32
    %11 = vector.broadcast %cst_10 : f32 to vector<8x256xf32>
    %12 = arith.mulf %11, %5 : vector<8x256xf32>
    %13 = arith.addf %10, %12 : vector<8x256xf32>
    %c0_11 = arith.constant 0 : index
    %c0_12 = arith.constant 0 : index
    %c0_13 = arith.constant 0 : index
    %c0_14 = arith.constant 0 : index
    %14 = vector.load %arg3[%c0_11, %c0_12, %c0_13, %c0_14] : memref<1x1x8x256xf32, #tpu.memory_space<vmem>>, vector<1x1x8x256xf32>
    %15 = vector.shape_cast %14 : vector<1x1x8x256xf32> to vector<8x256xf32>
    %16 = vector.shape_cast %13 : vector<8x256xf32> to vector<1x1x8x256xf32>
    tpu.vector_store %arg3[%c0_11, %c0_12, %c0_13, %c0_14], %16 {strides = array<i32>} : memref<1x1x8x256xf32, #tpu.memory_space<vmem>>, vector<1x1x8x256xf32>,
    return
  }
  func.func @transform_0(%arg0: i32, %arg1: i32) -> (i32, i32, i32, i32) {
    %c0_i32 = arith.constant 0 : i32
    %c0_i32_0 = arith.constant 0 : i32
    %c0_i32_1 = arith.constant 0 : i32
    return %arg0, %c0_i32, %arg1, %c0_i32_0 : i32, i32, i32, i32
  }
  func.func @transform_1(%arg0: i32, %arg1: i32) -> (i32, i32, i32, i32) {
    %c0_i32 = arith.constant 0 : i32
    %c0_i32_0 = arith.constant 0 : i32
    %c0_i32_1 = arith.constant 0 : i32
    return %arg0, %c0_i32, %arg1, %c0_i32_0 : i32, i32, i32, i32
  }
}

</mosaic_0001>

<bundles_post_ra>
// kernel: tpu_custom_call.1
= control target key start
LH: loop header
LB: loop body
LE: loop exit
PB: predicated region body
PF: predicated region fallthrough
CT: control target
= control target key end

     0   :  { %6 = vsyncpa [#allocation3], 0  ;;  %s660_s0 = inlined_call_operand.hbm [shape: f32[2,3,8,256], index: 0, kind: input, shape index: {}]   ;;  %s661_s1 = inlined_call_operand.hbm [shape: f32[2,1,8,256], index: 1, kind: output, shape index: {}]  }
   0x1   :  { %8 = vsyncpa [#allocation3 + $0x1], 0 }
   0x2   :  { %9 = vsyncpa [#allocation4], 0 }
   0x3   :  { %11 = vsyncpa [#allocation4 + $0x1], 0  ;;  %s486_s6 = smov 0   ;;  %s488_s7 = smov 0  }
   0x4   :  { %s490_s8 = smov 0   ;;  %s492_s9 = smov 0  }
   0x5   :  { %s494_s10 = smov 0   ;;  %s496_s11 = smov 0  }
   0x6 LB: > { %s274_s12 = sadd.s32 4294967295, %s470_s11   ;;  %s275_s13 = sadd.s32 4294967294, %s470_s11   ;;  %s470_s11 = sphi %s496_s11, %s17_s11   ;;  %s466_s10 = sphi %s494_s10, %s676_s10   ;;  %s462_s9 = sphi %s492_s9, %s675_s9   ;;  %s458_s8 = sphi %s490_s8, %s674_s8   ;;  %s454_s7 = sphi %s488_s7, %s673_s7   ;;  %s450_s6 = sphi %s486_s6, %s672_s6  }
   0x7   : > { %s29_s14 = sadd.s32 1, %s466_s10  ;;  %s38_s15 = sadd.s32 1, %s458_s8 }
   0x8   : > { %p31_p0 = scmp.ge.s32.totalorder %s29_s14, 2  ;;  %p45_p1 = scmp.ne.s32.totalorder %s458_s8, %s454_s7 }
   0x9   : > { %p46_p2 = scmp.eq.s32.totalorder %s470_s11, 0  ;;  %p51_p3 = scmp.ne.s32.totalorder %s454_s7, %s450_s6 }
   0xa   : > { %s678_s14 = smov (%p31_p0, %s29_s14), 0  ;;  %p52_p5 = scmp.eq.s32.totalorder %s274_s12, 0 }
   0xb   : > { %p527_p4 = por %p46_p2, %p45_p1  ;;  %s33_s17 = ssub.s32 %s466_s10, %s678_s14 }
   0xc   : > { %p77_p6 = scmp.eq.s32.totalorder %s274_s12, 1  ;;  %p36_p7 = scmp.eq.s32.totalorder %s33_s17, 0 }
   0xd   : > { %p533_p8 = por %p52_p5, %p51_p3  ;;  %p83_p10 = scmp.eq.s32.totalorder %s275_s13, 1 }
   0xe   : > { %p537_p9 = por %p77_p6, %p45_p1  ;;  %p306_p13 = scmp.lt.s32.totalorder %s470_s11, 2 }
   0xf   : > { %s542_s20 = scalar_select %p36_p7, %s458_s8, %s38_s15  }
  0x10   : > { %s665_s19 = scalar_select %p537_p9, 1, 0 }
  0x11   : > { %p544_p11 = por %p83_p10, %p51_p3  ;;  %s103_s22 = sand.u32 1, %s458_s8  }
  0x12   : > { %s291_s23 = smul.u32 48, %s103_s22  ;;  %p554_p0 = pnand %p306_p13, %p527_p4 }
  0x13   : > { %s666_s21 = scalar_select %p544_p11, 1, 0 }
  0x14   : > { %s292_s24 = smul.u32 768, %s466_s10  ;;  %s107_s29 = scalar_lea.vmem [#allocation2], %s291_s23 }
  0x15   : > { %s116_s30 = sshll.u32 %s107_s29, 4  ;;  %s566_s2 = scalar_lea.sflag [#allocation3], %s103_s22  ;;  %s563_s30 = int_to_ptr.vmem [resolvable:$true] %s116_s30 }
  0x16   : > { %s561_s28 = scalar_lea.hbm %s660_s0, %s292_s24  ;;  %p360_p3 = pneg %p554_p0 }
  0x17   : > { %s358_s3 = scalar_lea.hbm %s561_s28, 768  ;;  %s363_s12 = scalar_lea.hbm %s660_s0, 1536 }
  0x18   : > { %p359_p2 = scmp.ne.s32.totalorder %s561_s28, %s358_s3  ;;  %p364_p6 = scmp.lt.u32.totalorder %s561_s28, %s660_s0 }
  0x19   : > { %p365_p7 = scmp.lt.u32.totalorder %s363_s12, %s358_s3  ;;  %p367_p13 = scmp.lt.u32.totalorder %s358_s3, %s561_s28 }
  0x1a   : > { %p361_p4 = pnand %p360_p3, %p359_p2 }
  0x1b   : > { %p366_p10 = por %p365_p7, %p364_p6 }
  0x1c   : > { %p362_p5 = pneg %p361_p4 }
  0x1d   : > { %p368_p12 = por %p367_p13, %p366_p10 }
  0x1f   : > { %p369_p1 = pnand %p368_p12, %p362_p5 }
  0x21   : > { %372 = shalt.err (!%p369_p1)
}
  0x22   : > { %s373_s16 = scalar_lea.vmem %s563_s30, 768  ;;  %s472_s17 = smov [#allocation2]  }
  0x23   : > { %p374_p2 = scmp.ne.s32.totalorder %s563_s30, %s373_s16  ;;  %s378_s22 = sshll.u32 %s472_s17, 4  ;;  %s379_s22 = int_to_ptr.vmem [resolvable:$false] %s378_s22 }
  0x24   : > { %s380_s23 = scalar_lea.vmem %s379_s22, 1536  ;;  %p381_p9 = scmp.lt.s32.totalorder %s563_s30, %s379_s22 }
  0x25   : > { %p376_p4 = pnand %p374_p2, %p360_p3  ;;  %p382_p6 = scmp.lt.s32.totalorder %s380_s23, %s373_s16 }
  0x27   : > { %p377_p11 = pneg %p376_p4  ;;  %p383_p7 = por %p382_p6, %p381_p9 }
  0x29   : > { %p384_p10 = pnand %p383_p7, %p377_p11 }
  0x2b   : > { %387 = shalt.err (!%p384_p10)
}
  0x2c   : > { %s473_s24 = smov 256   ;;  %s474_s26 = smov 16  }
  0x2d   : > { %301 = dma.hbm_to_vmem [thread:$0]  (!%p554_p0), %s561_s28, 768, %s563_s30, %s566_s2, %s473_s24, %s473_s24, %s474_s26  }
  0x2e   : > { %p124_p12 = scmp.lt.s32.totalorder %s470_s11, 3  ;;  %p668_p1 = scmp.ge.s32.totalorder %s470_s11, 1 }
  0x30   : > { %p125_p3 = pnand %p668_p1, %p124_p12 }
  0x31   : > { %s598_s27 = sand.u32 (!%p125_p3), 1, %s454_s7  }
  0x32   : > { %128 = sbr.rel (%p125_p3) target bundleno = 85 (0x55), region = 24  ;;  %s131_s3 = scalar_lea.sflag (!%p125_p3), [#allocation3], %s598_s27 }
  0x33   : > { %s293_s29 = smul.u32 (!%p125_p3), 48, %s598_s27 }
  0x35   : > { %s134_s4 = scalar_lea.vmem (!%p125_p3), [#allocation2], %s293_s29 }
  0x39   : > { %441 = dma.done.wait (%p533_p8), %s131_s3, 768  }
  0x3a   : > { %443 = vsyncadd (%p533_p8), %s131_s3, 4294966528  ;;  %s280_s25 = sshll.u32 %s598_s27, 4  ;;  %v153_v0 = vld [vmem:[%s134_s4] sm:$0xff]  ;;  %v281_v1 = vld [vmem:[%s134_s4 + $0x10] sm:$0xff]  ;;  %s290_s30 = sshll.u32 %s462_s9, 8 }
  0x3b   : > { %v283_v2 = vld [vmem:[%s134_s4 + $0x20] sm:$0xff]  ;;  %v161_v3 = vmul.f32 0.2989, %v153_v0  ;;  %v163_v4 = vmul.f32 0.587, %v281_v1  ;;  %v154_v6 = vld [vmem:[%s134_s4 + $0x8] sm:$0xff]  ;;  %s613_s12 = scalar_lea.hbm %s661_s1, %s290_s30 }
  0x3c   : > { %v167_v5 = vmul.f32 0.114, %v283_v2  ;;  %v282_v7 = vld [vmem:[%s134_s4 + $0x18] sm:$0xff]  ;;  %v284_v8 = vld [vmem:[%s134_s4 + $0x28] sm:$0xff]  ;;  %v162_v10 = vmul.f32 0.2989, %v154_v6 }
  0x3d   : > { %v165_v9 = vadd.f32 %v163_v4, %v161_v3  ;;  %v164_v11 = vmul.f32 0.587, %v282_v7  ;;  %v168_v12 = vmul.f32 0.114, %v284_v8  ;;  %s152_s18 = scalar_lea.vmem [#allocation5], %s280_s25  ;;  %s174_s13 = scalar_lea.sflag [#allocation4], %s598_s27 }
  0x3e   : > { %s190_s28 = sshll.u32 %s152_s18, 4  ;;  %p669_p9 = scmp.ne.s32.totalorder %s665_s19, 0  ;;  %s608_s28 = int_to_ptr.vmem [resolvable:$true] %s190_s28 }
  0x3f   : > { %v169_v13 = vadd.f32 %v167_v5, %v165_v9  ;;  %v166_v14 = vadd.f32 %v164_v11, %v162_v10  ;;  %s388_s15 = scalar_lea.vmem %s608_s28, 256  ;;  %s475_s9 = smov [#allocation5]  }
  0x40   : > { %p389_p8 = scmp.ne.s32.totalorder %s608_s28, %s388_s15  ;;  %s392_s16 = sshll.u32 %s475_s9, 4  ;;  %s393_s16 = int_to_ptr.vmem [resolvable:$false] %s392_s16 }
  0x41   : > { %171 = vst [vmem:[%s152_s18] sm:$0xff] %v169_v13  ;;  %v170_v15 = vadd.f32 %v168_v12, %v166_v14  ;;  %s394_s17 = scalar_lea.vmem %s393_s16, 512  ;;  %p395_p5 = scmp.lt.s32.totalorder %s608_s28, %s393_s16 }
  0x42   : > { %p390_p11 = pnand %p389_p8, %p669_p9  ;;  %p396_p13 = scmp.lt.s32.totalorder %s394_s17, %s388_s15 }
  0x43   : > { %172 = vst [vmem:[%s152_s18 + $0x8] sm:$0xff] %v170_v15 }
  0x44   : > { %p391_p0 = pneg %p390_p11  ;;  %p397_p2 = por %p396_p13, %p395_p5 }
  0x46   : > { %p398_p4 = pnand %p397_p2, %p391_p0 }
  0x48   : > { %401 = shalt.err (!%p398_p4)
}
  0x49   : > { %s402_s22 = scalar_lea.hbm %s613_s12, 256  ;;  %s406_s26 = scalar_lea.hbm %s661_s1, 512 }
  0x4a   : > { %p403_p6 = scmp.ne.s32.totalorder %s613_s12, %s402_s22  ;;  %p407_p12 = scmp.lt.u32.totalorder %s613_s12, %s661_s1 }
  0x4b   : > { %p408_p1 = scmp.lt.u32.totalorder %s406_s26, %s402_s22  ;;  %p410_p8 = scmp.lt.u32.totalorder %s402_s22, %s613_s12 }
  0x4c   : > { %p404_p7 = pnand %p403_p6, %p669_p9 }
  0x4d   : > { %p409_p3 = por %p408_p1, %p407_p12 }
  0x4e   : > { %p405_p10 = pneg %p404_p7 }
  0x4f   : > { %p411_p11 = por %p410_p8, %p409_p3 }
  0x51   : > { %p412_p0 = pnand %p411_p11, %p405_p10 }
  0x53   : > { %415 = shalt.err (!%p412_p0)
}
  0x54   : > { %296 = dma.vmem_to_hbm [thread:$0]  (%p669_p9), %s608_s28, 256, %s613_s12, %s174_s13  }
  0x55 PF: > { %s202_s3 = sand.u32 1, %s450_s6   ;;  %p670_p5 = scmp.ne.s32.totalorder %s666_s21, 0 }
  0x56   : > { %p671_p13 = scmp.ge.s32.totalorder %s470_s11, 2  ;;  %s203_s4 = scalar_lea.sflag [#allocation4], %s202_s3 }
  0x58   : > { %p303_p2 = pnand %p671_p13, %p670_p5 }
  0x5a   : > { %445 = dma.done.wait (!%p303_p2), %s203_s4, 256  }
  0x5b   : > { %447 = vsyncadd (!%p303_p2), %s203_s4, 4294967040  ;;  %s17_s11 = sadd.s32 1, %s470_s11   ;;  %s672_s6 = smov %s454_s7 }
  0x5c   : > { %p14_p4 = scmp.ge.s32.totalorder %s17_s11, 4   ;;  %s673_s7 = smov %s458_s8 }
  0x5d   : > { %s674_s8 = smov %s542_s20  ;;  %s675_s9 = smov %s466_s10 }
  0x5e   : > { %s676_s10 = smov %s678_s14  ;;  %16 = sbr.rel (!%p14_p4) target bundleno = 6 (0x6), region = 71 }
  0x65   :  { %208 = vsyncpa [#allocation3], 1 }
  0x66   :  { %210 = vsyncpa [#allocation3 + $0x1], 1 }
  0x67   :  { %211 = vsyncpa [#allocation4], 1 }
  0x68   :  { %213 = vsyncpa [#allocation4 + $0x1], 1 }

</bundles_post_ra>
